<compile_context>
chip_gen: v6e
topology: v6e:2x2x1
jax: 0.10.0
libtpu: 0.0.40
codegen_flags: <defaults>
</compile_context>

<pallas_src>
import functools

import jax
import jax.numpy as jnp
from jax.experimental import pallas as pl
from jax.experimental.pallas import tpu as pltpu


def _round_up(n: int, m: int) -> int:
    return ((n + m - 1) // m) * m


def residual_block_kernel(x_ref, w0_ref, b0_ref, w1_ref, b1_ref, o_ref):
    x = x_ref[...]                                                  # (TB, Fp) f32
    # relu -> linear0
    h = jnp.maximum(x, 0.0)
    h = jnp.dot(h, w0_ref[...], preferred_element_type=jnp.float32) + b0_ref[...]
    # relu -> (dropout p=0 is identity) -> linear1
    h = jnp.maximum(h, 0.0)
    y = jnp.dot(h, w1_ref[...], preferred_element_type=jnp.float32) + b1_ref[...]
    # residual add (f32) then cast to output dtype
    o_ref[...] = (x + y).astype(o_ref.dtype)


@functools.partial(jax.jit, static_argnames=("block_b",))
def residual_block(x, w0_t, b0, w1_t, b1, *, block_b=256):
    """x: (B, F). w0_t, w1_t: (F, F) pre-transposed to (in, out). b0, b1: (F,)."""
    B, F = x.shape
    Fp = _round_up(F, 128)                     # lane-dense feature dim
    TB = min(block_b, _round_up(B, 8))         # sublane-aligned batch tile
    Bp = _round_up(B, TB)
    grid_b = Bp // TB

    f32 = jnp.float32
    x_p = x.astype(f32)
    if (Bp, Fp) != (B, F):
        x_p = jnp.pad(x_p, ((0, Bp - B), (0, Fp - F)))

    def pad_w(w):
        w = w.astype(f32)
        return jnp.pad(w, ((0, Fp - F), (0, Fp - F))) if Fp != F else w

    def pad_b(b):
        b = b.astype(f32)
        if Fp != F:
            b = jnp.pad(b, (0, Fp - F))
        return b.reshape(1, Fp)

    w0_p, w1_p = pad_w(w0_t), pad_w(w1_t)
    b0_p, b1_p = pad_b(b0), pad_b(b1)

    # VMEM budget: double-buffered x/out tiles + (conservatively double-buffered)
    # resident weights/biases, plus headroom.
    vmem_needed = 4 * (2 * 2 * TB * Fp        # x + out tiles, double-buffered
                       + 2 * 2 * Fp * Fp      # w0^T + w1^T
                       + 2 * 2 * 8 * Fp)      # biases (sublane-padded)
    vmem_limit = max(vmem_needed + (2 << 20), 8 << 20)

    flops = 2 * 2 * Bp * Fp * Fp + 4 * Bp * Fp
    bytes_accessed = 4 * (2 * Bp * Fp + 2 * Fp * Fp + 2 * Fp)

    out_p = pl.pallas_call(
        residual_block_kernel,
        out_shape=jax.ShapeDtypeStruct((Bp, Fp), f32),
        grid=(grid_b,),
        in_specs=[
            pl.BlockSpec((TB, Fp), lambda i: (i, 0)),   # x: batch-tiled, pipelined
            pl.BlockSpec((Fp, Fp), lambda i: (0, 0)),   # w0^T: VMEM-resident
            pl.BlockSpec((1, Fp), lambda i: (0, 0)),    # b0
            pl.BlockSpec((Fp, Fp), lambda i: (0, 0)),   # w1^T: VMEM-resident
            pl.BlockSpec((1, Fp), lambda i: (0, 0)),    # b1
        ],
        out_specs=pl.BlockSpec((TB, Fp), lambda i: (i, 0)),
        input_output_aliases={0: 0},                    # out overwrites padded x
        compiler_params=pltpu.CompilerParams(
            dimension_semantics=("parallel",),
            vmem_limit_bytes=vmem_limit,
        ),
        cost_estimate=pl.CostEstimate(
            flops=flops, transcendentals=0, bytes_accessed=bytes_accessed),
    )(x_p, w0_p, b0_p, w1_p, b1_p)

    return out_p[:B, :F].astype(x.dtype)


def init_params(key, features):
    """Synthetic init mirroring nn.Linear defaults + zero_initialization (PyTorch layout)."""
    k0w, k0b, k1w, k1b = jax.random.split(key, 4)
    bound = 1.0 / jnp.sqrt(features)
    # linear_layers[0]: default nn.Linear init (uniform(-1/sqrt(fan_in), 1/sqrt(fan_in)))
    w0 = jax.random.uniform(k0w, (features, features), jnp.float32, -bound, bound)
    b0 = jax.random.uniform(k0b, (features,), jnp.float32, -bound, bound)
    # linear_layers[1]: zero_initialization=True -> uniform(-0.001, 0.001)
    w1 = jax.random.uniform(k1w, (features, features), jnp.float32, -0.001, 0.001)
    b1 = jax.random.uniform(k1b, (features,), jnp.float32, -0.001, 0.001)
    return w0, b0, w1, b1


def reference(x, w0, b0, w1, b1):
    h = jnp.maximum(x, 0.0)
    h = h @ w0.T + b0
    h = jnp.maximum(h, 0.0)
    return x + (h @ w1.T + b1)


if __name__ == "__main__":
    key = jax.random.PRNGKey(0)
    kx, kp, kx2 = jax.random.split(key, 3)

    # Case 1: small shape consistent with the module (single batch tile).
    batch, features = 8, 32
    x = jax.random.normal(kx, (batch, features), jnp.float32)
    w0, b0, w1, b1 = init_params(kp, features)
    # Pre-transpose once at setup time (parameters are stored as (in, out)).
    w0_t, w1_t = jnp.asarray(w0.T), jnp.asarray(w1.T)

    out = residual_block(x, w0_t, b0, w1_t, b1)
    out = jax.block_until_ready(out)
    ref = reference(x, w0, b0, w1, b1)
    assert out.shape == (batch, features)
    assert jnp.allclose(out, ref, atol=1e-5, rtol=1e-5)

    # Case 2: exercises multi-tile batch grid + feature padding (B=96, F=160).
    batch2, features2 = 96, 160
    x2 = jax.random.normal(kx2, (batch2, features2), jnp.float32)
    w0b, b0b, w1b, b1b = init_params(kp, features2)
    w0b_t, w1b_t = jnp.asarray(w0b.T), jnp.asarray(w1b.T)

    out2 = residual_block(x2, w0b_t, b0b, w1b_t, b1b, block_b=32)
    out2 = jax.block_until_ready(out2)
    ref2 = reference(x2, w0b, b0b, w1b, b1b)
    assert out2.shape == (batch2, features2)
    assert jnp.allclose(out2, ref2, atol=1e-5, rtol=1e-5)

    print("KERNEL_OK")
</pallas_src>

<mosaic_0001>
module attributes {stable_mosaic.version = 11 : i64} {
  func.func @residual_block_kernel(%arg0: i32, %arg1: memref<8x128xf32, #tpu.memory_space<vmem>>, %arg2: memref<128x128xf32, #tpu.memory_space<vmem>>, %arg3: memref<1x128xf32, #tpu.memory_space<vmem>>, %arg4: memref<128x128xf32, #tpu.memory_space<vmem>>, %arg5: memref<1x128xf32, #tpu.memory_space<vmem>>, %arg6: memref<8x128xf32, #tpu.memory_space<vmem>>) attributes {dimension_semantics = [#tpu.dimension_semantics<parallel>], iteration_bounds = array<i64: 1>, scalar_prefetch = 0 : i64, scratch_operands = 0 : i64, tpu.core_type = #tpu.core_type<tc>, window_params = [{transform_indices = @transform_0, window_bounds = array<i64: 8, 128>}, {pipeline_mode = #tpu.pipeline_mode<synchronous>, transform_indices = @transform_1, window_bounds = array<i64: 128, 128>}, {pipeline_mode = #tpu.pipeline_mode<synchronous>, transform_indices = @transform_2, window_bounds = array<i64: 1, 128>}, {pipeline_mode = #tpu.pipeline_mode<synchronous>, transform_indices = @transform_3, window_bounds = array<i64: 128, 128>}, {pipeline_mode = #tpu.pipeline_mode<synchronous>, transform_indices = @transform_4, window_bounds = array<i64: 1, 128>}, {transform_indices = @transform_5, window_bounds = array<i64: 8, 128>}]} {
    %c0 = arith.constant 0 : index
    %c0_0 = arith.constant 0 : index
    %0 = vector.load %arg1[%c0, %c0_0] : memref<8x128xf32, #tpu.memory_space<vmem>>, vector<8x128xf32>
    %cst = arith.constant 0.000000e+00 : f32
    %1 = vector.broadcast %cst : f32 to vector<8x128xf32>
    %2 = arith.maximumf %0, %1 : vector<8x128xf32>
    %c0_1 = arith.constant 0 : index
    %c0_2 = arith.constant 0 : index
    %3 = vector.load %arg2[%c0_1, %c0_2] : memref<128x128xf32, #tpu.memory_space<vmem>>, vector<128x128xf32>
    %cst_3 = arith.constant dense<0.000000e+00> : vector<8x128xf32>
    %4 = tpu.matmul %2, %3, %cst_3 {dimension_numbers = #tpu.dot_dimension_numbers<[1], [0], [0], [1], [0, 0, 1, 1], [], []>} : vector<8x128xf32>, vector<128x128xf32>, vector<8x128xf32> -> vector<8x128xf32>
    %c0_4 = arith.constant 0 : index
    %c0_5 = arith.constant 0 : index
    %5 = vector.load %arg3[%c0_4, %c0_5] : memref<1x128xf32, #tpu.memory_space<vmem>>, vector<1x128xf32>
    %6 = vector.broadcast %5 : vector<1x128xf32> to vector<8x128xf32>
    %7 = arith.addf %4, %6 : vector<8x128xf32>
    %cst_6 = arith.constant 0.000000e+00 : f32
    %8 = vector.broadcast %cst_6 : f32 to vector<8x128xf32>
    %9 = arith.maximumf %7, %8 : vector<8x128xf32>
    %c0_7 = arith.constant 0 : index
    %c0_8 = arith.constant 0 : index
    %10 = vector.load %arg4[%c0_7, %c0_8] : memref<128x128xf32, #tpu.memory_space<vmem>>, vector<128x128xf32>
    %cst_9 = arith.constant dense<0.000000e+00> : vector<8x128xf32>
    %11 = tpu.matmul %9, %10, %cst_9 {dimension_numbers = #tpu.dot_dimension_numbers<[1], [0], [0], [1], [0, 0, 1, 1], [], []>} : vector<8x128xf32>, vector<128x128xf32>, vector<8x128xf32> -> vector<8x128xf32>
    %c0_10 = arith.constant 0 : index
    %c0_11 = arith.constant 0 : index
    %12 = vector.load %arg5[%c0_10, %c0_11] : memref<1x128xf32, #tpu.memory_space<vmem>>, vector<1x128xf32>
    %13 = vector.broadcast %12 : vector<1x128xf32> to vector<8x128xf32>
    %14 = arith.addf %11, %13 : vector<8x128xf32>
    %15 = arith.addf %0, %14 : vector<8x128xf32>
    %c0_12 = arith.constant 0 : index
    %c0_13 = arith.constant 0 : index
    %16 = vector.load %arg6[%c0_12, %c0_13] : memref<8x128xf32, #tpu.memory_space<vmem>>, vector<8x128xf32>
    tpu.vector_store %arg6[%c0_12, %c0_13], %15 {strides = array<i32>} : memref<8x128xf32, #tpu.memory_space<vmem>>, vector<8x128xf32>,
    return
  }
  func.func @transform_0(%arg0: i32) -> (i32, i32) {
    %c0_i32 = arith.constant 0 : i32
    %c0_i32_0 = arith.constant 0 : i32
    return %arg0, %c0_i32 : i32, i32
  }
  func.func @transform_1(%arg0: i32) -> (i32, i32) {
    %c0_i32 = arith.constant 0 : i32
    %c0_i32_0 = arith.constant 0 : i32
    %c0_i32_1 = arith.constant 0 : i32
    return %c0_i32, %c0_i32_0 : i32, i32
  }
  func.func @transform_2(%arg0: i32) -> (i32, i32) {
    %c0_i32 = arith.constant 0 : i32
    %c0_i32_0 = arith.constant 0 : i32
    %c0_i32_1 = arith.constant 0 : i32
    return %c0_i32, %c0_i32_0 : i32, i32
  }
  func.func @transform_3(%arg0: i32) -> (i32, i32) {
    %c0_i32 = arith.constant 0 : i32
    %c0_i32_0 = arith.constant 0 : i32
    %c0_i32_1 = arith.constant 0 : i32
    return %c0_i32, %c0_i32_0 : i32, i32
  }
  func.func @transform_4(%arg0: i32) -> (i32, i32) {
    %c0_i32 = arith.constant 0 : i32
    %c0_i32_0 = arith.constant 0 : i32
    %c0_i32_1 = arith.constant 0 : i32
    return %c0_i32, %c0_i32_0 : i32, i32
  }
  func.func @transform_5(%arg0: i32) -> (i32, i32) {
    %c0_i32 = arith.constant 0 : i32
    %c0_i32_0 = arith.constant 0 : i32
    return %arg0, %c0_i32 : i32, i32
  }
}

</mosaic_0001>

<bundles_post_ra>
// kernel: residual_block.1
= control target key start
LH: loop header
LB: loop body
LE: loop exit
PB: predicated region body
PF: predicated region fallthrough
CT: control target
= control target key end

     0   :  { %v323_v0 = vmov 0.0   ;;  %vm324_vm0 = vmmov 0   ;;  %s497_s1 = inlined_call_operand.vmem [shape: f32[128,128], index: 1, kind: input, shape index: {}]   ;;  %s498_s3 = inlined_call_operand.vmem [shape: f32[128,128], index: 3, kind: input, shape index: {}]   ;;  %s499_s0 = inlined_call_operand.vmem [shape: f32[8,128], index: 0, kind: input, shape index: {}, may-alias: {0,5}]   ;;  %s500_s2 = inlined_call_operand.vmem [shape: f32[1,128], index: 2, kind: input, shape index: {}]   ;;  %s501_s4 = inlined_call_operand.vmem [shape: f32[1,128], index: 4, kind: input, shape index: {}]   ;;  %s502_s5 = inlined_call_operand.vmem [shape: f32[8,128], index: 5, kind: output, shape index: {}, may-alias: {0,5}]  }
   0x1   :  { %251 = vmatprep.subr.mxu0 %v323_v0  ;;  %v37_v1 = vld [vmem:[%s497_s1 + $0x78] sm:$0xff]  ;;  %v36_v2 = vld [vmem:[%s497_s1 + $0x70] sm:$0xff]  ;;  %283 = vmatprep.mubr.msk.f32.mxu0 %vm324_vm0, %v323_v0  ;;  %v35_v3 = vld [vmem:[%s497_s1 + $0x68] sm:$0xff] }
   0x2   :  { %252 = vmatpush3.msra.mxu0 %v37_v1  ;;  %286 = vmatprep.subr.mxu1 %v323_v0  ;;  %v34_v4 = vld [vmem:[%s497_s1 + $0x60] sm:$0xff]  ;;  %v131_v5 = vld [vmem:[%s498_s3 + $0x78] sm:$0xff]  ;;  %v130_v7 = vld [vmem:[%s498_s3 + $0x70] sm:$0xff] }
   0x3   :  { %253 = vmatprep.subr.mxu0 %v323_v0  ;;  %318 = vmatprep.mubr.msk.f32.mxu1 %vm324_vm0, %v323_v0  ;;  %v33_v6 = vld [vmem:[%s497_s1 + $0x58] sm:$0xff]  ;;  %v129_v8 = vld [vmem:[%s498_s3 + $0x68] sm:$0xff]  ;;  %v32_v9 = vld [vmem:[%s497_s1 + $0x50] sm:$0xff] }
   0x4   :  { %254 = vmatpush3.msra.mxu0 %v36_v2  ;;  %287 = vmatpush3.msra.mxu1 %v131_v5  ;;  %v128_v10 = vld [vmem:[%s498_s3 + $0x60] sm:$0xff]  ;;  %v31_v11 = vld [vmem:[%s497_s1 + $0x48] sm:$0xff]  ;;  %v127_v12 = vld [vmem:[%s498_s3 + $0x58] sm:$0xff] }
   0x5   :  { %255 = vmatprep.subr.mxu0 %v323_v0  ;;  %288 = vmatprep.subr.mxu1 %v323_v0  ;;  %v30_v13 = vld [vmem:[%s497_s1 + $0x40] sm:$0xff]  ;;  %v126_v14 = vld [vmem:[%s498_s3 + $0x50] sm:$0xff]  ;;  %v29_v15 = vld [vmem:[%s497_s1 + $0x38] sm:$0xff] }
   0x6   :  { %256 = vmatpush3.msra.mxu0 %v35_v3  ;;  %289 = vmatpush3.msra.mxu1 %v130_v7  ;;  %v125_v16 = vld [vmem:[%s498_s3 + $0x48] sm:$0xff]  ;;  %v28_v17 = vld [vmem:[%s497_s1 + $0x30] sm:$0xff]  ;;  %v124_v18 = vld [vmem:[%s498_s3 + $0x40] sm:$0xff] }
   0x7   :  { %257 = vmatprep.subr.mxu0 %v323_v0  ;;  %290 = vmatprep.subr.mxu1 %v323_v0  ;;  %v27_v19 = vld [vmem:[%s497_s1 + $0x28] sm:$0xff]  ;;  %v123_v20 = vld [vmem:[%s498_s3 + $0x38] sm:$0xff]  ;;  %v26_v21 = vld [vmem:[%s497_s1 + $0x20] sm:$0xff] }
   0x8   :  { %258 = vmatpush3.msra.mxu0 %v34_v4  ;;  %291 = vmatpush3.msra.mxu1 %v129_v8  ;;  %v122_v22 = vld [vmem:[%s498_s3 + $0x30] sm:$0xff]  ;;  %v25_v23 = vld [vmem:[%s497_s1 + $0x18] sm:$0xff]  ;;  %v121_v24 = vld [vmem:[%s498_s3 + $0x28] sm:$0xff] }
   0x9   :  { %259 = vmatprep.subr.mxu0 %v323_v0  ;;  %292 = vmatprep.subr.mxu1 %v323_v0  ;;  %v24_v25 = vld [vmem:[%s497_s1 + $0x10] sm:$0xff]  ;;  %v20_v26 = vld [vmem:[%s499_s0] sm:$0xff]  ;;  %v23_v28 = vld [vmem:[%s497_s1 + $0x8] sm:$0xff] }
   0xa   :  { %260 = vmatpush3.msra.mxu0 %v33_v6  ;;  %293 = vmatpush3.msra.mxu1 %v128_v10  ;;  %v120_v27 = vld [vmem:[%s498_s3 + $0x20] sm:$0xff]  ;;  %v119_v29 = vld [vmem:[%s498_s3 + $0x18] sm:$0xff]  ;;  %v21_v31 = vmax.f32 %v20_v26, 0.0  ;;  %v118_v32 = vld [vmem:[%s498_s3 + $0x10] sm:$0xff] }
   0xb   :  { %261 = vmatprep.subr.mxu0 %v323_v0  ;;  %294 = vmatprep.subr.mxu1 %v323_v0  ;;  %v22_v30 = vld [vmem:[%s497_s1] sm:$0xff]  ;;  %v117_v33 = vld [vmem:[%s498_s3 + $0x8] sm:$0xff] }
   0xc   :  { %262 = vmatpush3.msra.mxu0 %v32_v9  ;;  %295 = vmatpush3.msra.mxu1 %v127_v12  ;;  %v116_v34 = vld [vmem:[%s498_s3] sm:$0xff] }
   0xd   :  { %263 = vmatprep.subr.mxu0 %v323_v0  ;;  %296 = vmatprep.subr.mxu1 %v323_v0  ;;  %v215_v35 = vld [vmem:[%s500_s2] ss:$0 sm:$0xff] }
   0xe   :  { %264 = vmatpush3.msra.mxu0 %v31_v11  ;;  %297 = vmatpush3.msra.mxu1 %v126_v14  ;;  %v216_v40 = vld [vmem:[%s501_s4] ss:$0 sm:$0xff] }
   0xf   :  { %265 = vmatprep.subr.mxu0 %v323_v0  ;;  %298 = vmatprep.subr.mxu1 %v323_v0 }
  0x10   :  { %266 = vmatpush3.msra.mxu0 %v30_v13  ;;  %299 = vmatpush3.msra.mxu1 %v125_v16 }
  0x11   :  { %267 = vmatprep.subr.mxu0 %v323_v0  ;;  %300 = vmatprep.subr.mxu1 %v323_v0 }
  0x12   :  { %268 = vmatpush3.msra.mxu0 %v29_v15  ;;  %301 = vmatpush3.msra.mxu1 %v124_v18 }
  0x13   :  { %269 = vmatprep.subr.mxu0 %v323_v0  ;;  %302 = vmatprep.subr.mxu1 %v323_v0 }
  0x14   :  { %270 = vmatpush3.msra.mxu0 %v28_v17  ;;  %303 = vmatpush3.msra.mxu1 %v123_v20 }
  0x15   :  { %271 = vmatprep.subr.mxu0 %v323_v0  ;;  %304 = vmatprep.subr.mxu1 %v323_v0 }
  0x16   :  { %272 = vmatpush3.msra.mxu0 %v27_v19  ;;  %305 = vmatpush3.msra.mxu1 %v122_v22 }
  0x17   :  { %273 = vmatprep.subr.mxu0 %v323_v0  ;;  %306 = vmatprep.subr.mxu1 %v323_v0 }
  0x18   :  { %274 = vmatpush3.msra.mxu0 %v26_v21  ;;  %307 = vmatpush3.msra.mxu1 %v121_v24 }
  0x19   :  { %275 = vmatprep.subr.mxu0 %v323_v0  ;;  %308 = vmatprep.subr.mxu1 %v323_v0 }
  0x1a   :  { %276 = vmatpush3.msra.mxu0 %v25_v23  ;;  %309 = vmatpush3.msra.mxu1 %v120_v27 }
  0x1b   :  { %277 = vmatprep.subr.mxu0 %v323_v0  ;;  %310 = vmatprep.subr.mxu1 %v323_v0 }
  0x1c   :  { %278 = vmatpush3.msra.mxu0 %v24_v25  ;;  %311 = vmatpush3.msra.mxu1 %v119_v29 }
  0x1d   :  { %279 = vmatprep.subr.mxu0 %v323_v0  ;;  %312 = vmatprep.subr.mxu1 %v323_v0 }
  0x1e   :  { %280 = vmatpush3.msra.mxu0 %v23_v28  ;;  %313 = vmatpush3.msra.mxu1 %v118_v32 }
  0x1f   :  { %281 = vmatprep.subr.mxu0 %v323_v0  ;;  %314 = vmatprep.subr.mxu1 %v323_v0 }
  0x20   :  { %282 = vmatpush3.msra.mxu0 %v22_v30  ;;  %315 = vmatpush3.msra.mxu1 %v117_v33 }
  0x21   :  { %284 = vmatmul.mubr.f32.vlgmr.msra.gmra.mxu0 %v21_v31  ;;  %316 = vmatprep.subr.mxu1 %v323_v0 }
  0x22   :  { %317 = vmatpush3.msra.mxu1 %v116_v34 }
  0xe1   :  { %v111_v36 = vpop.f32.mrf.mxu0 }
  0xe2   :  { %v112_v37 = vadd.f32 %v215_v35, %v111_v36 }
  0xe3   :  { %v285_v38 = vpop.f32.mrf.mxu0 }
  0xe4   :  { %v115_v39 = vmax.f32 %v112_v37, 0.0 }
  0xe6   :  { %319 = vmatmul.mubr.f32.vlgmr.msra.gmra.mxu1 %v115_v39 }
 0x1a6   :  { %v205_v41 = vpop.f32.mrf.mxu1 }
 0x1a7   :  { %v206_v42 = vadd.f32 %v216_v40, %v205_v41 }
 0x1a8   :  { %v320_v43 = vpop.f32.mrf.mxu1 }
 0x1a9   :  { %v209_v44 = vadd.f32 %v206_v42, %v20_v26 }
 0x1ab   :  { %210 = vst [vmem:[%s502_s5] sm:$0xff] %v209_v44 }

</bundles_post_ra>
